<compile_context>
chip_gen: v7x
topology: tpu7x:2x2x1
jax: 0.10.0
libtpu: 0.0.40
codegen_flags: <defaults>
</compile_context>

<pallas_src>
import math

import jax
import jax.numpy as jnp
import numpy as np
from jax.experimental import pallas as pl
from jax.experimental.pallas import tpu as pltpu


def _make_kernel_right(padding_idx: int, half: int, embedding_dim: int,
                       tile_t: int, batch: int):
    """Right-padding (left_pad=0): position depends only on t -> hoist over B."""
    odd = (embedding_dim % 2 == 1)

    def kernel(freq_ref, x_ref, o_ref):
        i = pl.program_id(0)
        x = x_ref[...]                                               # (B, tile_t)
        maskf = (x != padding_idx).astype(jnp.float32)[:, :, None]   # (B, tile_t, 1)

        # positions for this tile (batch-independent), built sublane-major
        t = jax.lax.broadcasted_iota(jnp.int32, (tile_t, 1), 0)      # (tile_t, 1)
        pos = (t + i * tile_t + (padding_idx + 1)).astype(jnp.float32)
        ang = pos * freq_ref[...]                                    # (tile_t, half)

        s = jnp.sin(ang)[None, :, :]                                 # (1, tile_t, half)
        c = jnp.cos(ang)[None, :, :]
        o_ref[:, :, :half] = (s * maskf).astype(o_ref.dtype)
        o_ref[:, :, half:2 * half] = (c * maskf).astype(o_ref.dtype)
        if odd:
            o_ref[:, :, 2 * half:] = jnp.zeros((batch, tile_t, 1), o_ref.dtype)

    return kernel


def _make_kernel_left(padding_idx: int, half: int, embedding_dim: int,
                      tile_t: int, batch: int):
    """left_pad=1: per-row offset (precomputed outside) -> per-row angles."""
    odd = (embedding_dim % 2 == 1)

    def kernel(freq_ref, off_ref, x_ref, o_ref):
        i = pl.program_id(0)
        x = x_ref[...]                                               # (B, tile_t)
        maskf = (x != padding_idx).astype(jnp.float32)[:, :, None]   # (B, tile_t, 1)

        t = jax.lax.broadcasted_iota(jnp.int32, (batch, tile_t, 1), 1)
        pos = (t + i * tile_t).astype(jnp.float32) + off_ref[...][:, :, None]
        ang = pos * freq_ref[...][None, :, :]                        # (B, tile_t, half)

        s = jnp.sin(ang)
        c = jnp.cos(ang)
        o_ref[:, :, :half] = (s * maskf).astype(o_ref.dtype)
        o_ref[:, :, half:2 * half] = (c * maskf).astype(o_ref.dtype)
        if odd:
            o_ref[:, :, 2 * half:] = jnp.zeros((batch, tile_t, 1), o_ref.dtype)

    return kernel


def _choose_tile_t(B: int, T: int, D: int) -> int:
    """~2 MiB output blocks (double-buffered fits all VMEM budgets incl. v7x)."""
    bytes_per_row = max(1, B * D * 4)
    target_rows = max(1, (2 << 20) // bytes_per_row)
    if target_rows >= T:
        return T                       # whole T in one block (block == full dim)
    return min(T, max(128, (target_rows // 128) * 128))   # lane-aligned for x


def sinusoidal_positional_embedding(x, embedding_dim, padding_idx=0, left_pad=0,
                                    tile_t=None):
    """x: (B, T) int ids -> (B, T, embedding_dim) float32 positional embeddings."""
    B, T = x.shape
    D = int(embedding_dim)
    half = D // 2
    assert half > 1, "embedding_dim must give half_dim > 1 (matches torch formula)"
    scale = math.log(10000.0) / (half - 1)

    # trace-time constant frequencies, fed as a tiny VMEM input
    freqs = jnp.asarray(
        np.exp(-scale * np.arange(half, dtype=np.float32))[None, :])  # (1, half)

    if tile_t is None:
        tile_t = _choose_tile_t(B, T, D)
    grid = (pl.cdiv(T, tile_t),)

    x = x.astype(jnp.int32)
    out_shape = jax.ShapeDtypeStruct((B, T, D), jnp.float32)
    f_spec = pl.BlockSpec((1, half), lambda i: (0, 0))
    x_spec = pl.BlockSpec((B, tile_t), lambda i: (0, i))
    o_spec = pl.BlockSpec((B, tile_t, D), lambda i: (0, i, 0))
    cparams = pltpu.CompilerParams(dimension_semantics=("parallel",))

    if left_pad:
        # per-row nonpad counts need the FULL row -> compute outside the kernel
        nonpad = jnp.sum((x != padding_idx).astype(jnp.int32), axis=1, keepdims=True)
        off = (nonpad - T + (padding_idx + 1)).astype(jnp.float32)    # (B, 1)
        kernel = _make_kernel_left(padding_idx, half, D, tile_t, B)
        cost = pl.CostEstimate(flops=3 * B * T * half,
                               transcendentals=2 * B * T * half,
                               bytes_accessed=B * T * D * 4 + B * T * 4)
        return pl.pallas_call(
            kernel,
            out_shape=out_shape,
            grid=grid,
            in_specs=[f_spec, pl.BlockSpec((B, 1), lambda i: (0, 0)), x_spec],
            out_specs=o_spec,
            compiler_params=cparams,
            cost_estimate=cost,
        )(freqs, off, x)
    else:
        kernel = _make_kernel_right(padding_idx, half, D, tile_t, B)
        cost = pl.CostEstimate(flops=3 * B * T * half,
                               transcendentals=2 * T * half,   # hoisted over B
                               bytes_accessed=B * T * D * 4 + B * T * 4)
        return pl.pallas_call(
            kernel,
            out_shape=out_shape,
            grid=grid,
            in_specs=[f_spec, x_spec],
            out_specs=o_spec,
            compiler_params=cparams,
            cost_estimate=cost,
        )(freqs, x)


# ------------------------- pure-numpy reference -------------------------
def _reference(x, embedding_dim, padding_idx=0, left_pad=0):
    B, T = x.shape
    max_pos = padding_idx + 1 + T
    half = embedding_dim // 2
    scale = math.log(10000.0) / (half - 1)
    freqs = np.exp(np.arange(half, dtype=np.float32) * -scale)
    ang = np.arange(max_pos, dtype=np.float32)[:, None] * freqs[None, :]
    table = np.concatenate([np.sin(ang), np.cos(ang)], axis=1)
    if embedding_dim % 2 == 1:
        table = np.concatenate([table, np.zeros((max_pos, 1), np.float32)], axis=1)
    table[padding_idx, :] = 0.0

    xn = np.asarray(x)
    mask = xn != padding_idx
    pos = np.broadcast_to(np.arange(T) + padding_idx + 1, (B, T)).copy()
    if left_pad:
        pos = pos - T + mask.sum(axis=1, keepdims=True)
    positions = np.where(mask, pos, xn)   # pads keep value == padding_idx
    return table[positions.reshape(-1)].reshape(B, T, embedding_dim)


if __name__ == "__main__":
    B, T, D = 2, 16, 32
    padding_idx = 0

    key = jax.random.PRNGKey(0)
    tokens = jax.random.randint(key, (B, T), minval=1, maxval=100, dtype=jnp.int32)
    lengths = jnp.array([[12], [9]], dtype=jnp.int32)

    # ---- right padding (left_pad=0, default path) ----
    right_mask = jnp.arange(T)[None, :] < lengths
    x_right = jnp.where(right_mask, tokens, padding_idx).astype(jnp.int32)
    out_r = sinusoidal_positional_embedding(x_right, D, padding_idx, left_pad=0)
    out_r = jax.block_until_ready(out_r)
    np.testing.assert_allclose(np.asarray(out_r),
                               _reference(x_right, D, padding_idx, 0),
                               rtol=1e-5, atol=1e-5)

    # ---- left padding (left_pad=1 path) ----
    left_mask = jnp.arange(T)[None, :] >= (T - lengths)
    x_left = jnp.where(left_mask, tokens, padding_idx).astype(jnp.int32)
    out_l = sinusoidal_positional_embedding(x_left, D, padding_idx, left_pad=1)
    out_l = jax.block_until_ready(out_l)
    np.testing.assert_allclose(np.asarray(out_l),
                               _reference(x_left, D, padding_idx, 1),
                               rtol=1e-5, atol=1e-5)

    print("KERNEL_OK")
</pallas_src>

<mosaic_0001>
module attributes {stable_mosaic.version = 11 : i64} {
  func.func @kernel(%arg0: i32, %arg1: memref<1x16xf32, #tpu.memory_space<vmem>>, %arg2: memref<2x16xi32, #tpu.memory_space<vmem>>, %arg3: memref<2x16x32xf32, #tpu.memory_space<vmem>>) attributes {dimension_semantics = [#tpu.dimension_semantics<parallel>], iteration_bounds = array<i64: 1>, scalar_prefetch = 0 : i64, scratch_operands = 0 : i64, tpu.core_type = #tpu.core_type<tc>, window_params = [{pipeline_mode = #tpu.pipeline_mode<synchronous>, transform_indices = @transform_0, window_bounds = array<i64: 1, 16>}, {transform_indices = @transform_1, window_bounds = array<i64: 2, 16>}, {transform_indices = @transform_2, window_bounds = array<i64: 2, 16, 32>}]} {
    %c0 = arith.constant 0 : index
    %c0_0 = arith.constant 0 : index
    %0 = vector.load %arg2[%c0, %c0_0] : memref<2x16xi32, #tpu.memory_space<vmem>>, vector<2x16xi32>
    %c0_i32 = arith.constant 0 : i32
    %1 = vector.broadcast %c0_i32 : i32 to vector<2x16xi32>
    %2 = arith.cmpi ne, %0, %1 : vector<2x16xi32>
    %3 = arith.extui %2 : vector<2x16xi1> to vector<2x16xi32>
    %4 = arith.sitofp %3 : vector<2x16xi32> to vector<2x16xf32>
    %5 = vector.shape_cast %4 : vector<2x16xf32> to vector<2x16x1xf32>
    %6 = tpu.iota {dimensions = array<i32: 0>} : vector<16x1xi32>
    %c16_i32 = arith.constant 16 : i32
    %7 = arith.muli %arg0, %c16_i32 : i32
    %8 = vector.broadcast %7 : i32 to vector<16x1xi32>
    %9 = arith.addi %6, %8 : vector<16x1xi32>
    %c1_i32 = arith.constant 1 : i32
    %10 = vector.broadcast %c1_i32 : i32 to vector<16x1xi32>
    %11 = arith.addi %9, %10 : vector<16x1xi32>
    %12 = arith.sitofp %11 : vector<16x1xi32> to vector<16x1xf32>
    %c0_1 = arith.constant 0 : index
    %c0_2 = arith.constant 0 : index
    %13 = vector.load %arg1[%c0_1, %c0_2] : memref<1x16xf32, #tpu.memory_space<vmem>>, vector<1x16xf32>
    %14 = vector.broadcast %12 : vector<16x1xf32> to vector<16x16xf32>
    %15 = vector.broadcast %13 : vector<1x16xf32> to vector<16x16xf32>
    %16 = arith.mulf %14, %15 : vector<16x16xf32>
    %17 = math.sin %16 : vector<16x16xf32>
    %18 = vector.shape_cast %17 : vector<16x16xf32> to vector<1x16x16xf32>
    %19 = math.cos %16 : vector<16x16xf32>
    %20 = vector.shape_cast %19 : vector<16x16xf32> to vector<1x16x16xf32>
    %21 = vector.broadcast %18 : vector<1x16x16xf32> to vector<2x16x16xf32>
    %22 = vector.broadcast %5 : vector<2x16x1xf32> to vector<2x16x16xf32>
    %23 = arith.mulf %21, %22 : vector<2x16x16xf32>
    %c0_3 = arith.constant 0 : index
    %c0_4 = arith.constant 0 : index
    %c0_5 = arith.constant 0 : index
    %24 = vector.load %arg3[%c0_3, %c0_4, %c0_5] : memref<2x16x32xf32, #tpu.memory_space<vmem>>, vector<2x16x16xf32>
    tpu.vector_store %arg3[%c0_3, %c0_4, %c0_5], %23 {strides = array<i32>} : memref<2x16x32xf32, #tpu.memory_space<vmem>>, vector<2x16x16xf32>,
    %25 = vector.broadcast %20 : vector<1x16x16xf32> to vector<2x16x16xf32>
    %26 = vector.broadcast %5 : vector<2x16x1xf32> to vector<2x16x16xf32>
    %27 = arith.mulf %25, %26 : vector<2x16x16xf32>
    %c0_6 = arith.constant 0 : index
    %c0_7 = arith.constant 0 : index
    %c16 = arith.constant 16 : index
    %28 = vector.load %arg3[%c0_6, %c0_7, %c16] : memref<2x16x32xf32, #tpu.memory_space<vmem>>, vector<2x16x16xf32>
    tpu.vector_store %arg3[%c0_6, %c0_7, %c16], %27 {strides = array<i32>} : memref<2x16x32xf32, #tpu.memory_space<vmem>>, vector<2x16x16xf32>,
    return
  }
  func.func @transform_0(%arg0: i32) -> (i32, i32) {
    %c0_i32 = arith.constant 0 : i32
    %c0_i32_0 = arith.constant 0 : i32
    %c0_i32_1 = arith.constant 0 : i32
    return %c0_i32, %c0_i32_0 : i32, i32
  }
  func.func @transform_1(%arg0: i32) -> (i32, i32) {
    %c0_i32 = arith.constant 0 : i32
    %c0_i32_0 = arith.constant 0 : i32
    return %c0_i32, %arg0 : i32, i32
  }
  func.func @transform_2(%arg0: i32) -> (i32, i32, i32) {
    %c0_i32 = arith.constant 0 : i32
    %c0_i32_0 = arith.constant 0 : i32
    %c0_i32_1 = arith.constant 0 : i32
    return %c0_i32, %arg0, %c0_i32_0 : i32, i32, i32
  }
}

</mosaic_0001>

<bundles_post_ra>
// kernel: tpu_custom_call.1
= control target key start
LH: loop header
LB: loop body
LE: loop exit
PB: predicated region body
PF: predicated region fallthrough
CT: control target
= control target key end

     0   :  { %7 = vsyncpa [#allocation3], 0  ;;  %s757_s0 = inlined_call_operand.hbm [shape: f32[1,16], index: 0, kind: input, shape index: {}]   ;;  %s758_s1 = inlined_call_operand.vmem [shape: s32[2,16], index: 1, kind: input, shape index: {}]   ;;  %s759_s2 = inlined_call_operand.hbm [shape: f32[2,16,32], index: 2, kind: output, shape index: {}]  }
   0x1   :  { %8 = vsyncpa [#allocation4], 0  ;;  %s629_s9 = smov [#allocation2]   ;;  %s581_s13 = scalar_lea.hbm %s757_s0, 16 }
   0x2   :  { %s15_s10 = sshll.u32 %s629_s9, 4  ;;  %p582_p0 = scmp.ne.s32.totalorder %s757_s0, %s581_s13  ;;  %s16_s10 = int_to_ptr.vmem [resolvable:$true] %s15_s10 }
   0x3   :  { %p585_p1 = scmp.lt.u32.totalorder %s581_s13, %s757_s0 }
   0x5   :  { %p587_p2 = pnand %p585_p1, %p582_p0 }
   0x7   :  { %590 = shalt.err (!%p587_p2)
}
   0x8   :  { %s591_s18 = scalar_lea.vmem %s16_s10, 16  ;;  %s595_s19 = scalar_lea.vmem %s16_s10, 32 }
   0x9   :  { %p592_p3 = scmp.ne.s32.totalorder %s16_s10, %s591_s18  ;;  %p596_p4 = scmp.lt.s32.totalorder %s16_s10, %s16_s10 }
   0xa   :  { %p597_p5 = scmp.lt.s32.totalorder %s595_s19, %s591_s18 }
   0xc   :  { %p598_p6 = por %p597_p5, %p596_p4 }
   0xe   :  { %p599_p7 = pnand %p598_p6, %p592_p3 }
  0x10   :  { %602 = shalt.err (!%p599_p7)
}
  0x11   :  { %18 = dma.hbm_to_vmem [thread:$0]  %s757_s0, 16, %s16_s10, [#allocation3]  }
  0x12   :  { %625 = dma.done.wait [#allocation3], 16  }
  0x13   :  { %626 = vsyncadd [#allocation3], 4294967280  ;;  %v28_v0 = vlaneseq  ;;  %v24_v8 = vld [vmem:[%s758_s1] sm:$0x3]  ;;  %v536_v9 = vld [vmem:[#allocation2] ss:$0 sm:$0xff] }
  0x14   :  { %vm25_vm0 = vcmp.ne.s32.totalorder %v24_v8, 0  ;;  %v630_v12 = vmov 0.0   ;;  %v631_v36 = vmov 683565275   ;;  %v632_v38 = vmov 2475754826  }
  0x15   :  { %v29_v1 = vshrl.u32 %v28_v0, 7  ;;  %v535_v13 = vsel %vm25_vm0, 1.0, %v630_v12  ;;  %v633_v40 = vmov 2131351028   ;;  %v634_v42 = vmov 2102212464  }
  0x16   :  { %v635_v44 = vmov 920167782   ;;  %v636_v52 = vmov 1326507024   ;;  %s637_s0 = smov 16   ;;  %s638_s1 = smov [#allocation5]  }
  0x17   :  { %v57_v2 = vadd.s32 1, %v29_v1  ;;  %v52_v3 = vadd.s32 8, %v29_v1  ;;  %v30_v4 = vsub.s32 0, %v29_v1  ;;  %v41_v5 = vsub.s32 1, %v29_v1  ;;  %s523_s24 = sshll.u32 %s638_s1, 4  ;;  %s524_s24 = int_to_ptr.vmem [resolvable:$true] %s523_s24 }
  0x18   :  { %s603_s25 = scalar_lea.vmem %s524_s24, 512  ;;  %p608_p9 = scmp.lt.s32.totalorder %s524_s24, %s524_s24 }
  0x19   :  { %v59_v6 = vcvt.s32.f32 %v57_v2  ;;  %v58_v7 = vadd.s32 1, %v52_v3  ;;  %v31_v14 = vrot.slane %v535_v13, %v30_v4  ;;  %v42_v15 = vrot.slane %v535_v13, %v41_v5  ;;  %p604_p8 = scmp.ne.s32.totalorder %s524_s24, %s603_s25  ;;  %p609_p10 = scmp.lt.s32.totalorder %s603_s25, %s603_s25 }
  0x1b   :  { %v671_v10 = vmul.f32 %v536_v9, %v59_v6  ;;  %v60_v11 = vcvt.s32.f32 %v58_v7  ;;  %33 = vbcast.lane.b32.xlu0 %v31_v14, 256  ;;  %44 = vbcast.lane.b32.xlu1 %v42_v15, 256  ;;  %p610_p11 = por %p609_p10, %p608_p9 }
  0x1d   :  { %v70_v16 = vand.u32 2147483647, %v671_v10  ;;  %v73_v17 = vand.u32 2139095040, %v671_v10  ;;  %v675_v18 = vmul.f32 %v536_v9, %v60_v11  ;;  %vm72_vm15 = vcmp.lt.s32.totalorder %v671_v10, 0  ;;  %p611_p12 = pnand %p610_p11, %p604_p8 }
  0x1f   :  { %v74_v19 = vshrl.u32 %v73_v17, 23  ;;  %v177_v20 = vand.u32 2139095040, %v675_v18  ;;  %v77_v21 = vand.u32 8388607, %v70_v16  ;;  %v174_v22 = vand.u32 2147483647, %v675_v18 }
  0x20   :  { %37 = vbcast.lane.b32.xlu0 %v31_v14, 264  ;;  %48 = vbcast.lane.b32.xlu1 %v42_v15, 264  ;;  %vm71_vm0 = vcmp.le.f32.partialorder %v70_v16, 0.7853982 }
  0x21   :  { %v537_v23 = vadd.s32 4294967169, %v74_v19  ;;  %v178_v24 = vshrl.u32 %v177_v20, 23  ;;  %v78_v27 = vor.u32 8388608, %v77_v21  ;;  %v683_v28 = vand.u32 8388607, %v174_v22 }
  0x23   :  { %v80_v25 = vadd.s32 1, %v537_v23  ;;  %v541_v26 = vadd.s32 4294967169, %v178_v24  ;;  %v685_v33 = vshll.u32 %v78_v27, 8  ;;  %v182_v34 = vor.u32 8388608, %v683_v28 }
  0x25   :  { %vm81_vm1 = vcmp.gt.s32.totalorder %v80_v25, 0  ;;  %v184_v29 = vadd.s32 1, %v541_v26 }
  0x26   :  { %v82_v30 = vsel %vm81_vm1, %v80_v25, 0  ;;  %vm176_vm1 = vcmp.lt.s32.totalorder %v675_v18, 0 }
  0x27   :  { %v83_v31 = vshrl.u32 %v82_v30, 5  ;;  %v84_v32 = vand.u32 31, %v82_v30  ;;  %vm185_vm2 = vcmp.gt.s32.totalorder %v184_v29, 0 }
  0x28   :  { %v186_v46 = vsel %vm185_vm2, %v184_v29, 0  ;;  %vm175_vm2 = vcmp.le.f32.partialorder %v174_v22, 0.7853982 }
  0x29   :  { %v85_v35 = vsub.s32 32, %v84_v32  ;;  %v87_v37 = vshll.u32 %v631_v36, %v84_v32  ;;  %v90_v39 = vshll.u32 %v632_v38, %v84_v32  ;;  %v93_v41 = vshll.u32 %v633_v40, %v84_v32 }
  0x2a   :  { %v96_v43 = vshll.u32 %v634_v42, %v84_v32  ;;  %v99_v45 = vshll.u32 %v635_v44, %v84_v32  ;;  %vm102_vm3 = vcmp.lt.s32.totalorder %v83_v31, 1  ;;  %vm103_vm4 = vcmp.lt.s32.totalorder %v83_v31, 2 }
  0x2b   :  { %v86_v47 = vshrl.u32 %v631_v36, %v85_v35  ;;  %v88_v48 = vshrl.u32 %v632_v38, %v85_v35  ;;  %v91_v49 = vshrl.u32 %v633_v40, %v85_v35  ;;  %v94_v50 = vshrl.u32 %v634_v42, %v85_v35 }
  0x2c   :  { %v97_v51 = vshrl.u32 %v635_v44, %v85_v35  ;;  %v100_v53 = vshrl.u32 %v636_v52, %v85_v35  ;;  %vm104_vm5 = vcmp.lt.s32.totalorder %v83_v31, 3  ;;  %vm105_vm6 = vcmp.lt.s32.totalorder %v83_v31, 4 }
  0x2d   :  { %v89_v54 = vor.u32 %v88_v48, %v87_v37  ;;  %v92_v55 = vor.u32 %v91_v49, %v90_v39  ;;  %v95_v56 = vor.u32 %v94_v50, %v93_v41  ;;  %v187_v59 = vshrl.u32 %v186_v46, 5 }
  0x2e   :  { %v98_v57 = vor.u32 %v97_v51, %v96_v43  ;;  %v101_v58 = vor.u32 %v100_v53, %v99_v45  ;;  %v188_v60 = vand.u32 31, %v186_v46 }
  0x2f   :  { %v106_v61 = vsel %vm102_vm3, %v86_v47, %v89_v54  ;;  %v107_v62 = vsel %vm105_vm6, %v95_v56, 2102212464  ;;  %v110_v63 = vsel %vm102_vm3, %v89_v54, %v92_v55  ;;  %v114_v0 = vsel %vm102_vm3, %v92_v55, %v95_v56 }
  0x30   :  { %v108_v1 = vsel %vm104_vm5, %v92_v55, %v107_v62  ;;  %v111_v2 = vsel %vm105_vm6, %v98_v57, 920167782  ;;  %v115_v3 = vsel %vm105_vm6, %v101_v58, 1326507024  ;;  %v189_v4 = vsub.s32 32, %v188_v60 }
  0x31   :  { %v109_v5 = vsel %vm103_vm4, %v106_v61, %v108_v1  ;;  %v112_v6 = vsel %vm104_vm5, %v95_v56, %v111_v2  ;;  %v116_v7 = vsel %vm104_vm5, %v98_v57, %v115_v3  ;;  %v191_v8 = vshll.u32 %v631_v36, %v188_v60 }
  0x32   :  { %v113_v9 = vsel %vm103_vm4, %v110_v63, %v112_v6  ;;  %v117_v11 = vsel %vm103_vm4, %v114_v0, %v116_v7  ;;  %v125_v12 = vmul.u32 %v685_v33, %v109_v5  ;;  %v190_v13 = vshrl.u32 %v631_v36, %v189_v4 }
  0x33   :  { %v699_v14 = vmul.u32.u64.low %v685_v33, %v117_v11  ;;  %v700_v15 = vmul.u32.u64.high %v685_v33, %v117_v11, %v699_v14  ;;  %v703_v17 = vmul.u32.u64.low %v685_v33, %v113_v9  ;;  %v704_v19 = vmul.u32.u64.high %v685_v33, %v113_v9, %v703_v17 }
  0x34   :  { %v192_v20 = vshrl.u32 %v632_v38, %v189_v4  ;;  %v194_v21 = vshll.u32 %v632_v38, %v188_v60  ;;  %v195_v23 = vshrl.u32 %v633_v40, %v189_v4  ;;  %v197_v24 = vshll.u32 %v633_v40, %v188_v60 }
  0x35   :  { %v198_v25 = vshrl.u32 %v634_v42, %v189_v4  ;;  %v200_v26 = vshll.u32 %v634_v42, %v188_v60  ;;  %v201_v27 = vshrl.u32 %v635_v44, %v189_v4  ;;  %v203_v29 = vshll.u32 %v635_v44, %v188_v60 }
  0x36   :  { %v193_v30 = vor.u32 %v192_v20, %v191_v8  ;;  %v196_v31 = vor.u32 %v195_v23, %v194_v21  ;;  %v204_v32 = vshrl.u32 %v636_v52, %v189_v4  ;;  %vm206_vm7 = vcmp.lt.s32.totalorder %v187_v59, 1 }
  0x37   :  { %vm127_vm8 = vc.u32 %v700_v15, %v703_v17  ;;  %v128_v35 = vadd.s32 1, %v704_v19  ;;  %v199_v33 = vor.u32 %v198_v25, %v197_v24  ;;  %v222_v36 = vshll.u32 %v182_v34, 8 }
  0x38   :  { %v202_v37 = vor.u32 %v201_v27, %v200_v26  ;;  %v205_v38 = vor.u32 %v204_v32, %v203_v29  ;;  %vm207_vm9 = vcmp.lt.s32.totalorder %v187_v59, 2  ;;  %vm208_vm10 = vcmp.lt.s32.totalorder %v187_v59, 3 }
  0x39   :  { %v129_v39 = vsel %vm127_vm8, %v128_v35, %v704_v19  ;;  %vm209_vm11 = vcmp.lt.s32.totalorder %v187_v59, 4  ;;  %v210_v40 = vsel %vm206_vm7, %v190_v13, %v193_v30  ;;  %v214_v41 = vsel %vm206_vm7, %v193_v30, %v196_v31 }
  0x3a   :  { %v130_v42 = vadd.s32 %v129_v39, %v125_v12  ;;  %v211_v43 = vsel %vm209_vm11, %v199_v33, 2102212464  ;;  %v215_v44 = vsel %vm209_vm11, %v202_v37, 920167782  ;;  %v218_v45 = vsel %vm206_vm7, %v196_v31, %v199_v33 }
  0x3b   :  { %v212_v46 = vsel %vm208_vm10, %v196_v31, %v211_v43  ;;  %v216_v47 = vsel %vm208_vm10, %v199_v33, %v215_v44  ;;  %v219_v28 = vsel %vm209_vm11, %v205_v38, 1326507024  ;;  %v126_v14 = vadd.s32 %v703_v17, %v700_v15 }
  0x3c   :  { %v131_v34 = vadd.s32 536870912, %v130_v42  ;;  %v217_v48 = vsel %vm207_vm9, %v214_v41, %v216_v47  ;;  %v220_v49 = vsel %vm208_vm10, %v202_v37, %v219_v28  ;;  %v213_v50 = vsel %vm207_vm9, %v210_v40, %v212_v46 }
  0x3d   :  { %v221_v51 = vsel %vm207_vm9, %v218_v45, %v220_v49  ;;  %v719_v52 = vmul.u32.u64.low %v222_v36, %v217_v48  ;;  %v720_v53 = vmul.u32.u64.high %v222_v36, %v217_v48, %v719_v52  ;;  %v229_v58 = vmul.u32 %v222_v36, %v213_v50 }
  0x3e   :  { %v132_v54 = vshrl.u32 %v131_v34, 30  ;;  %v722_v55 = vmul.u32.u64.low %v222_v36, %v221_v51  ;;  %v723_v56 = vmul.u32.u64.high %v222_v36, %v221_v51, %v722_v55 }
  0x3f   :  { %v232_v60 = vadd.s32 1, %v720_v53 }
  0x40   :  { %v133_v57 = vshll.u32 %v132_v54, 30  ;;  %vm231_vm12 = vc.u32 %v723_v56, %v719_v52  ;;  %v230_v27 = vadd.s32 %v719_v52, %v723_v56  ;;  %v156_v46 = vsub.s32 4, %v132_v54 }
  0x41   :  { %v233_v62 = vsel %vm231_vm12, %v232_v60, %v720_v53 }
  0x42   :  { %v134_v61 = vsub.s32 %v130_v42, %v133_v57  ;;  %v234_v0 = vadd.s32 %v233_v62, %v229_v58  ;;  %v157_v34 = vsel %vm72_vm15, %v156_v46, %v132_v54 }
  0x43   :  { %v159_v50 = vsel %vm71_vm0, 0, %v157_v34 }
  0x44   :  { %v136_v63 = vsub.s32 0, %v134_v61  ;;  %v235_v1 = vadd.s32 536870912, %v234_v0  ;;  %v163_v51 = vadd.s32 3, %v159_v50  ;;  %v371_v56 = vand.u32 3, %v159_v50 }
  0x46   :  { %v538_v59 = vmin.u32 %v136_v63, %v134_v61  ;;  %v236_v3 = vshrl.u32 %v235_v1, 30  ;;  %v164_v55 = vand.u32 3, %v163_v51  ;;  %vm376_vm4 = vcmp.eq.s32.totalorder %v371_v56, 2 }
  0x47   :  { %vm373_vm6 = vcmp.eq.s32.totalorder %v371_v56, 0  ;;  %vm372_vm8 = vcmp.lt.s32.totalorder %v371_v56, 2 }
  0x48   :  { %v138_v2 = vclz %v538_v59  ;;  %v237_v5 = vshll.u32 %v236_v3, 30  ;;  %v260_v48 = vsub.s32 4, %v236_v3  ;;  %vm169_vm3 = vcmp.eq.s32.totalorder %v164_v55, 2 }
  0x49   :  { %vm166_vm5 = vcmp.eq.s32.totalorder %v164_v55, 0  ;;  %vm165_vm7 = vcmp.lt.s32.totalorder %v164_v55, 2 }
  0x4a   :  { %v539_v4 = vadd.s32 4294967294, %v138_v2  ;;  %v238_v6 = vsub.s32 %v234_v0, %v237_v5  ;;  %v261_v16 = vsel %vm176_vm1, %v260_v48, %v236_v3 }
  0x4b   :  { %v263_v52 = vsel %vm175_vm2, 0, %v261_v16 }
  0x4c   :  { %vm540_vm13 = vcmp.lt.s32.totalorder %v539_v4, 0  ;;  %v240_v7 = vsub.s32 0, %v238_v6  ;;  %v267_v58 = vadd.s32 3, %v263_v52  ;;  %v474_v63 = vand.u32 3, %v263_v52 }
  0x4d   :  { %v141_v8 = vsel %vm540_vm13, 0, %v539_v4  ;;  %vm162_vm13 = vweird.f32 %v671_v10 }
  0x4e   :  { %v542_v9 = vmin.u32 %v240_v7, %v238_v6  ;;  %v146_v12 = vsub.s32 4294967266, %v141_v8  ;;  %v142_v19 = vsub.s32 32, %v141_v8  ;;  %v143_v24 = vshll.u32 %v134_v61, %v141_v8 }
  0x4f   :  { %v268_v62 = vand.u32 3, %v267_v58  ;;  %vm476_vm11 = vcmp.eq.s32.totalorder %v474_v63, 0  ;;  %vm479_vm12 = vcmp.eq.s32.totalorder %v474_v63, 2 }
  0x50   :  { %v242_v11 = vclz %v542_v9  ;;  %v147_v20 = vadd.s32 127, %v146_v12  ;;  %v144_v25 = vshrl.u32 %v126_v14, %v142_v19 }
  0x51   :  { %vm270_vm9 = vcmp.eq.s32.totalorder %v268_v62, 0  ;;  %vm273_vm10 = vcmp.eq.s32.totalorder %v268_v62, 2 }
  0x52   :  { %v543_v13 = vadd.s32 4294967294, %v242_v11  ;;  %v148_v26 = vshll.u32 %v147_v20, 23  ;;  %v145_v31 = vor.u32 %v144_v25, %v143_v24 }
  0x54   :  { %vm544_vm14 = vcmp.lt.s32.totalorder %v543_v13, 0  ;;  %v149_v32 = vor.u32 4788187, %v148_v26  ;;  %v152_v38 = vcvt.s32.f32 %v145_v31 }
  0x55   :  { %v245_v21 = vsel %vm544_vm14, 0, %v543_v13  ;;  %vm269_vm14 = vcmp.lt.s32.totalorder %v268_v62, 2 }
  0x56   :  { %v250_v23 = vsub.s32 4294967266, %v245_v21  ;;  %v246_v29 = vsub.s32 32, %v245_v21  ;;  %v247_v35 = vshll.u32 %v238_v6, %v245_v21  ;;  %v150_v37 = vand.u32 2147483647, %v149_v32 }
  0x58   :  { %v251_v30 = vadd.s32 127, %v250_v23  ;;  %v248_v33 = vshrl.u32 %v230_v27, %v246_v29  ;;  %v153_v39 = vmul.f32 %v152_v38, %v150_v37 }
  0x5a   :  { %v252_v36 = vshll.u32 %v251_v30, 23  ;;  %v249_v15 = vor.u32 %v248_v33, %v247_v35  ;;  %v154_v42 = vxor.u32 2147483648, %v153_v39 }
  0x5c   :  { %v253_v17 = vor.u32 4788187, %v252_v36  ;;  %v256_v41 = vcvt.s32.f32 %v249_v15  ;;  %v155_v44 = vsel %vm72_vm15, %v154_v42, %v153_v39  ;;  %vm475_vm15 = vcmp.lt.s32.totalorder %v474_v63, 2 }
  0x5d   :  { %v158_v47 = vsel %vm71_vm0, %v671_v10, %v155_v44  ;;  %vm266_vm0 = vweird.f32 %v675_v18 }
  0x5e   :  { %v254_v40 = vand.u32 2147483647, %v253_v17  ;;  %573 = vcosq.f32 %v158_v47 }
  0x5f   :  { %575 = vsinq.f32 %v158_v47 }
  0x60   :  { %v257_v43 = vmul.f32 %v256_v41, %v254_v40 }
  0x62   :  { %v258_v45 = vxor.u32 2147483648, %v257_v43 }
  0x64   :  { %v259_v28 = vsel %vm176_vm1, %v258_v45, %v257_v43  ;;  %vm488_vm1 = vcmask 130048  }
  0x65   :  { %v262_v49 = vsel %vm175_vm2, %v675_v18, %v259_v28  ;;  %vm513_vm2 = vcmask 261248  }
  0x66   :  { %577 = vcosq.f32 %v262_v49 }
  0x67   :  { %579 = vsinq.f32 %v262_v49 }
  0x68   :  { %v574_v53 = vpop.eup %573 }
  0x69   :  { %v576_v57 = vpop.eup %575  ;;  %v170_v60 = vxor.u32 2147483648, %v574_v53 }
  0x6a   :  { %v167_v61 = vxor.u32 2147483648, %v576_v57 }
  0x6b   :  { %v171_v0 = vsel %vm169_vm3, %v170_v60, %v576_v57  ;;  %v378_v59 = vsel %vm376_vm4, %v170_v60, %v576_v57 }
  0x6c   :  { %v168_v1 = vsel %vm166_vm5, %v574_v53, %v167_v61  ;;  %v375_v2 = vsel %vm373_vm6, %v574_v53, %v167_v61 }
  0x6d   :  { %v172_v5 = vsel %vm165_vm7, %v168_v1, %v171_v0  ;;  %v379_v6 = vsel %vm372_vm8, %v375_v2, %v378_v59 }
  0x6e   :  { %v173_v12 = vsel %vm162_vm13, nan, %v172_v5  ;;  %v380_v13 = vsel %vm162_vm13, nan, %v379_v6 }
  0x70   :  { %v578_v22 = vpop.eup %577 }
  0x71   :  { %v580_v54 = vpop.eup %579  ;;  %v274_v4 = vxor.u32 2147483648, %v578_v22 }
  0x72   :  { %v271_v3 = vxor.u32 2147483648, %v580_v54 }
  0x73   :  { %v275_v8 = vsel %vm273_vm10, %v274_v4, %v580_v54  ;;  %v481_v11 = vsel %vm479_vm12, %v274_v4, %v580_v54 }
  0x74   :  { %v272_v7 = vsel %vm270_vm9, %v578_v22, %v271_v3  ;;  %v478_v9 = vsel %vm476_vm11, %v578_v22, %v271_v3 }
  0x75   :  { %v276_v14 = vsel %vm269_vm14, %v272_v7, %v275_v8  ;;  %v482_v19 = vsel %vm475_vm15, %v478_v9, %v481_v11 }
  0x76   :  { %v277_v25 = vsel %vm266_vm0, nan, %v276_v14  ;;  %v483_v26 = vsel %vm266_vm0, nan, %v482_v19 }
  0x8d   :  { %v34_v20 = vpop.permute.xlu0 %33  ;;  %v45_v21 = vpop.permute.xlu1 %44 }
  0x8e   :  { %v484_v23 = vmul.f32 %v173_v12, %v34_v20  ;;  %v493_v24 = vmul.f32 %v380_v13, %v34_v20  ;;  %v486_v10 = vmul.f32 %v173_v12, %v45_v21  ;;  %v495_v27 = vmul.f32 %v380_v13, %v45_v21 }
  0x90   :  { %489 = vst.msk [vmem:[#allocation5] sm:$0xff] %vm488_vm1, %v484_v23  ;;  %501 = vrot.lane.b32.xlu0 %v493_v24, %s637_s0  ;;  %491 = vst.msk [vmem:[#allocation5 + $0x10] sm:$0xff] %vm488_vm1, %v486_v10 }
  0x92   :  { %v38_v29 = vpop.permute.xlu0 %37  ;;  %v49_v30 = vpop.permute.xlu1 %48 }
  0x93   :  { %v485_v18 = vmul.f32 %v277_v25, %v38_v29  ;;  %v494_v31 = vmul.f32 %v483_v26, %v38_v29  ;;  %v487_v32 = vmul.f32 %v277_v25, %v49_v30  ;;  %v496_v35 = vmul.f32 %v483_v26, %v49_v30 }
  0x94   :  { %505 = vrot.lane.b32.xlu0 %v495_v27, %s637_s0 }
  0x95   :  { %490 = vst.msk [vmem:[#allocation5 + $0x8] sm:$0xff] %vm488_vm1, %v485_v18  ;;  %503 = vrot.lane.b32.xlu1 %v494_v31, %s637_s0  ;;  %492 = vst.msk [vmem:[#allocation5 + $0x18] sm:$0xff] %vm488_vm1, %v487_v32 }
  0x99   :  { %507 = vrot.lane.b32.xlu1 %v496_v35, %s637_s0 }
 0x102   :  { %v502_v33 = vpop.permute.xlu0 %501 }
 0x103   :  { %514 = vst.msk [vmem:[#allocation5] sm:$0xff] %vm513_vm2, %v502_v33 }
 0x106   :  { %v506_v37 = vpop.permute.xlu0 %505 }
 0x107   :  { %v504_v36 = vpop.permute.xlu1 %503  ;;  %516 = vst.msk [vmem:[#allocation5 + $0x10] sm:$0xff] %vm513_vm2, %v506_v37 }
 0x108   :  { %515 = vst.msk [vmem:[#allocation5 + $0x8] sm:$0xff] %vm513_vm2, %v504_v36 }
 0x10b   :  { %v508_v38 = vpop.permute.xlu1 %507 }
 0x10c   :  { %517 = vst.msk [vmem:[#allocation5 + $0x18] sm:$0xff] %vm513_vm2, %v508_v38 }
 0x10d   :  { %614 = shalt.err (!%p611_p12)
}
 0x10e   :  { %s615_s28 = scalar_lea.hbm %s759_s2, 512 }
 0x10f   :  { %p616_p13 = scmp.ne.s32.totalorder %s759_s2, %s615_s28  ;;  %p619_p0 = scmp.lt.u32.totalorder %s615_s28, %s759_s2 }
 0x111   :  { %p621_p1 = pnand %p619_p0, %p616_p13 }
 0x113   :  { %624 = shalt.err (!%p621_p1)
}
 0x114   :  { %s639_s5 = smov 128   ;;  %s640_s6 = smov 8  }
 0x115   :  { %529 = dma.vmem_to_hbm [thread:$0]  %s524_s24, 512, %s759_s2, [#allocation4], %s639_s5, %s639_s5, %s640_s6  }
 0x116   :  { %627 = dma.done.wait [#allocation4], 512  }
 0x117   :  { %628 = vsyncadd [#allocation4], 4294966784 }
 0x118   :  { %533 = vsyncpa [#allocation3], 1 }
 0x119   :  { %534 = vsyncpa [#allocation4], 1 }

</bundles_post_ra>
